<compile_context>
chip_gen: v7x
topology: tpu7x:2x2x1
jax: 0.10.0
libtpu: 0.0.40
codegen_flags: <defaults>
</compile_context>

<pallas_src>
from functools import partial

import numpy as np
import jax
import jax.numpy as jnp
from jax.experimental import pallas as pl
from jax.experimental.pallas import tpu as pltpu


# ----------------------------------------------------------------------------
# Deterministic quaternion weight init (mirrors QuaternionInit, weight_dim=2).
# Returns components in shape (kh, kw, in_channels, out_channels).
# ----------------------------------------------------------------------------
def quaternion_init_2d(kernel_size, input_dim, nb_filters, criterion="he", seed=31337):
    kh, kw = kernel_size
    kernel_shape = (kh, kw, input_dim, nb_filters)
    receptive_field_size = kh * kw
    fan_in = input_dim * receptive_field_size
    fan_out = nb_filters * receptive_field_size
    if criterion == "glorot":
        scale = 1.0 / np.sqrt(2 * (fan_in + fan_out))
    elif criterion == "he":
        scale = 1.0 / np.sqrt(2 * fan_in)
    else:
        raise ValueError("Invalid criterion: " + criterion)

    rng = np.random.RandomState(seed)
    flat = int(np.prod(kernel_shape))
    modulus = rng.rayleigh(scale=scale, size=flat).reshape(kernel_shape)
    phase = rng.uniform(low=-np.pi, high=np.pi, size=kernel_shape)
    vec = rng.normal(0.0, 1.0, size=(flat, 3))
    vec = vec / np.linalg.norm(vec, axis=1, keepdims=True)
    u_i = vec[:, 0].reshape(kernel_shape)
    u_j = vec[:, 1].reshape(kernel_shape)
    u_k = vec[:, 2].reshape(kernel_shape)

    w_r = modulus * np.cos(phase)
    w_i = modulus * u_i * np.sin(phase)
    w_j = modulus * u_j * np.sin(phase)
    w_k = modulus * u_k * np.sin(phase)
    return w_r, w_i, w_j, w_k


# ----------------------------------------------------------------------------
# Hamilton-product block weight, shape (kh, kw, 4*Cin, 4*Cout).
# Row blocks = input components [r, i, j, k], col blocks = output [r, i, j, k],
# matching QuaternionConv.quaternion_conv:
#   out_r = x_r*W_r - x_i*W_i - x_j*W_j - x_k*W_k
#   out_i = x_r*W_i + x_i*W_r + x_j*W_k - x_k*W_j
#   out_j = x_r*W_j - x_i*W_k + x_j*W_r + x_k*W_i
#   out_k = x_r*W_k + x_i*W_j - x_j*W_i + x_k*W_r
# ----------------------------------------------------------------------------
def build_hamilton_weight(w_r, w_i, w_j, w_k):
    row_r = np.concatenate([w_r, w_i, w_j, w_k], axis=-1)      # x_r contributions
    row_i = np.concatenate([-w_i, w_r, -w_k, w_j], axis=-1)    # x_i contributions
    row_j = np.concatenate([-w_j, w_k, w_r, -w_i], axis=-1)    # x_j contributions
    row_k = np.concatenate([-w_k, -w_j, w_i, w_r], axis=-1)    # x_k contributions
    return np.concatenate([row_r, row_i, row_j, row_k], axis=-2)


def _round_up(x, m):
    return (x + m - 1) // m * m


# ----------------------------------------------------------------------------
# Pallas kernel: one M-tile of the flattened (batch*spatial) axis per step.
#   w_ref : (Cp, Kp)   bf16 transposed Hamilton weight (taps folded into K)
#   p_ref : (Kp, TM)   bf16 im2col patch tile (lanes = batch*spatial)
#   b_ref : (Cp, 1)    f32 bias column
#   o_ref : (Cp, TM)   f32 output tile (lane-dense, unmasked stores)
# ----------------------------------------------------------------------------
def qconv_matmul_kernel(w_ref, p_ref, b_ref, o_ref):
    acc = jnp.dot(w_ref[...], p_ref[...], preferred_element_type=jnp.float32)
    o_ref[...] = (acc + b_ref[...]).astype(o_ref.dtype)


# ----------------------------------------------------------------------------
# Wrapper: NCHW in / NCHW out (matches PyTorch module semantics).
# ----------------------------------------------------------------------------
def quaternion_conv2d(x_nchw, w_cat, bias, stride=(1, 1), padding=(0, 0),
                      dilation=(1, 1), compute_dtype=jnp.bfloat16, tile_m=4096):
    N, C4in, H, W = x_nchw.shape
    KH, KW, C4in_w, C4out = w_cat.shape
    assert C4in_w == C4in
    sh, sw = stride
    ph, pw = padding
    dh, dw = dilation

    OH = (H + 2 * ph - dh * (KH - 1) - 1) // sh + 1
    OW = (W + 2 * pw - dw * (KW - 1) - 1) // sw + 1

    # ---- plain-JAX glue: NCHW -> NHWC, zero pad ('zeros' padding_mode) ----
    x_nhwc = jnp.transpose(x_nchw, (0, 2, 3, 1))
    x_pad = jnp.pad(x_nhwc, ((0, 0), (ph, ph), (pw, pw), (0, 0)))

    # ---- im2col in the wrapper: taps folded into contraction dim K ----
    taps = []
    for ky in range(KH):
        for kx in range(KW):
            taps.append(x_pad[:,
                              ky * dh: ky * dh + (OH - 1) * sh + 1: sh,
                              kx * dw: kx * dw + (OW - 1) * sw + 1: sw,
                              :])
    patches = jnp.stack(taps, axis=3)                    # (N, OH, OW, KH*KW, 4*Cin)
    K = KH * KW * C4in
    M = N * OH * OW
    patches = patches.reshape(M, K).T                    # (K, M): K on sublanes, M on lanes

    # Pad K / Cout to multiples of 8 (sublane tile), M to a multiple of TM (lanes).
    Kp = _round_up(K, 8)
    Cp = _round_up(C4out, 8)
    TM = min(tile_m, _round_up(M, 128))
    M_pad = _round_up(M, TM)

    patches = jnp.pad(patches, ((0, Kp - K), (0, M_pad - M))).astype(compute_dtype)

    # Weight: (KH,KW,4Cin,4Cout) -> (K, 4Cout) -> transposed (4Cout, K); zero-pad.
    w_t = jnp.transpose(w_cat.reshape(K, C4out), (1, 0))
    w_t = jnp.pad(w_t, ((0, Cp - C4out), (0, Kp - K))).astype(compute_dtype)
    bias_col = jnp.pad(bias.reshape(C4out, 1), ((0, Cp - C4out), (0, 0))).astype(jnp.float32)

    grid_m = M_pad // TM
    out_t = pl.pallas_call(
        qconv_matmul_kernel,
        out_shape=jax.ShapeDtypeStruct((Cp, M_pad), jnp.float32),
        grid=(grid_m,),
        in_specs=[
            pl.BlockSpec((Cp, Kp), lambda m: (0, 0)),
            pl.BlockSpec((Kp, TM), lambda m: (0, m)),
            pl.BlockSpec((Cp, 1), lambda m: (0, 0)),
        ],
        out_specs=pl.BlockSpec((Cp, TM), lambda m: (0, m)),
        compiler_params=pltpu.CompilerParams(
            dimension_semantics=("parallel",)),
    )(w_t, patches, bias_col)

    # ---- plain-JAX glue: drop padding, un-flatten, back to NCHW ----
    out_t = out_t[:C4out, :M]                            # (4*Cout, N*OH*OW)
    out = out_t.reshape(C4out, N, OH, OW)
    return jnp.transpose(out, (1, 0, 2, 3))              # (N, 4*Cout, OH, OW)


# ----------------------------------------------------------------------------
# Pure-JAX reference (XLA conv) for verification.  Inputs are rounded to the
# same bf16 values the kernel consumes; accumulation is f32 in both paths.
# ----------------------------------------------------------------------------
def reference_conv(x_nchw, w_cat, bias, stride, padding, dilation,
                   compute_dtype=jnp.bfloat16):
    x_r = x_nchw.astype(compute_dtype).astype(jnp.float32)
    w_r = w_cat.astype(compute_dtype).astype(jnp.float32)
    w_oihw = jnp.transpose(w_r, (3, 2, 0, 1))            # (kh,kw,Cin4,Cout4) -> OIHW
    out = jax.lax.conv_general_dilated(
        x_r, w_oihw,
        window_strides=stride,
        padding=[(padding[0], padding[0]), (padding[1], padding[1])],
        rhs_dilation=dilation,
        dimension_numbers=("NCHW", "OIHW", "NCHW"),
        precision=jax.lax.Precision.HIGHEST)
    return out + bias.reshape(1, -1, 1, 1)


if __name__ == "__main__":
    # Module config: in_channels=1 (quaternion), out_channels=2, kernel=3,
    # stride=1, padding=1, dilation=1, bias=True -> x has 4*1=4 channels.
    in_channels = 1
    out_channels = 2
    kernel_size = (3, 3)
    stride = (1, 1)
    padding = (1, 1)
    dilation = (1, 1)

    # Deterministic parameters (QuaternionInit-style, seed 31337).
    w_r, w_i, w_j, w_k = quaternion_init_2d(kernel_size, in_channels,
                                            out_channels, criterion="he",
                                            seed=31337)
    w_cat = jnp.asarray(build_hamilton_weight(w_r, w_i, w_j, w_k),
                        dtype=jnp.float32)          # (kh, kw, 4*Cin, 4*Cout)
    bias = jnp.zeros((4 * out_channels,), dtype=jnp.float32)  # module zero-inits bias

    # Deterministic input, NCHW like PyTorch.
    key = jax.random.PRNGKey(0)
    x = jax.random.normal(key, (2, 4 * in_channels, 16, 16), dtype=jnp.float32)

    out = quaternion_conv2d(x, w_cat, bias, stride, padding, dilation)
    out = jax.block_until_ready(out)

    ref = reference_conv(x, w_cat, bias, stride, padding, dilation)
    ref = jax.block_until_ready(ref)

    np.testing.assert_allclose(np.asarray(out), np.asarray(ref),
                               rtol=2e-3, atol=2e-3)
    print("KERNEL_OK")
</pallas_src>

<mosaic_0001>
module attributes {stable_mosaic.version = 11 : i64} {
  func.func @qconv_matmul_kernel(%arg0: i32, %arg1: memref<8x40xbf16, #tpu.memory_space<vmem>>, %arg2: memref<40x512xbf16, #tpu.memory_space<vmem>>, %arg3: memref<8x1xf32, #tpu.memory_space<vmem>>, %arg4: memref<8x512xf32, #tpu.memory_space<vmem>>) attributes {dimension_semantics = [#tpu.dimension_semantics<parallel>], iteration_bounds = array<i64: 1>, scalar_prefetch = 0 : i64, scratch_operands = 0 : i64, tpu.core_type = #tpu.core_type<tc>, window_params = [{pipeline_mode = #tpu.pipeline_mode<synchronous>, transform_indices = @transform_0, window_bounds = array<i64: 8, 40>}, {transform_indices = @transform_1, window_bounds = array<i64: 40, 512>}, {pipeline_mode = #tpu.pipeline_mode<synchronous>, transform_indices = @transform_2, window_bounds = array<i64: 8, 1>}, {transform_indices = @transform_3, window_bounds = array<i64: 8, 512>}]} {
    %c0 = arith.constant 0 : index
    %c0_0 = arith.constant 0 : index
    %0 = vector.load %arg1[%c0, %c0_0] : memref<8x40xbf16, #tpu.memory_space<vmem>>, vector<8x40xbf16>
    %c0_1 = arith.constant 0 : index
    %c0_2 = arith.constant 0 : index
    %1 = vector.load %arg2[%c0_1, %c0_2] : memref<40x512xbf16, #tpu.memory_space<vmem>>, vector<40x512xbf16>
    %cst = arith.constant dense<0.000000e+00> : vector<8x512xf32>
    %2 = tpu.matmul %0, %1, %cst {dimension_numbers = #tpu.dot_dimension_numbers<[1], [0], [0], [1], [0, 0, 1, 1], [], []>} : vector<8x40xbf16>, vector<40x512xbf16>, vector<8x512xf32> -> vector<8x512xf32>
    %c0_3 = arith.constant 0 : index
    %c0_4 = arith.constant 0 : index
    %3 = vector.load %arg3[%c0_3, %c0_4] : memref<8x1xf32, #tpu.memory_space<vmem>>, vector<8x1xf32>
    %4 = vector.broadcast %3 : vector<8x1xf32> to vector<8x512xf32>
    %5 = arith.addf %2, %4 : vector<8x512xf32>
    %c0_5 = arith.constant 0 : index
    %c0_6 = arith.constant 0 : index
    %6 = vector.load %arg4[%c0_5, %c0_6] : memref<8x512xf32, #tpu.memory_space<vmem>>, vector<8x512xf32>
    tpu.vector_store %arg4[%c0_5, %c0_6], %5 {strides = array<i32>} : memref<8x512xf32, #tpu.memory_space<vmem>>, vector<8x512xf32>,
    return
  }
  func.func @transform_0(%arg0: i32) -> (i32, i32) {
    %c0_i32 = arith.constant 0 : i32
    %c0_i32_0 = arith.constant 0 : i32
    %c0_i32_1 = arith.constant 0 : i32
    return %c0_i32, %c0_i32_0 : i32, i32
  }
  func.func @transform_1(%arg0: i32) -> (i32, i32) {
    %c0_i32 = arith.constant 0 : i32
    %c0_i32_0 = arith.constant 0 : i32
    return %c0_i32, %arg0 : i32, i32
  }
  func.func @transform_2(%arg0: i32) -> (i32, i32) {
    %c0_i32 = arith.constant 0 : i32
    %c0_i32_0 = arith.constant 0 : i32
    %c0_i32_1 = arith.constant 0 : i32
    return %c0_i32, %c0_i32_0 : i32, i32
  }
  func.func @transform_3(%arg0: i32) -> (i32, i32) {
    %c0_i32 = arith.constant 0 : i32
    %c0_i32_0 = arith.constant 0 : i32
    return %c0_i32, %arg0 : i32, i32
  }
}

</mosaic_0001>

<bundles_post_ra>
// kernel: tpu_custom_call.1
= control target key start
LH: loop header
LB: loop body
LE: loop exit
PB: predicated region body
PF: predicated region fallthrough
CT: control target
= control target key end

     0   :  { %8 = vsyncpa [#allocation3], 0  ;;  %s356_s0 = inlined_call_operand.vmem [shape: bf16[8,40], index: 0, kind: input, shape index: {}]   ;;  %s357_s1 = inlined_call_operand.hbm [shape: bf16[40,512], index: 1, kind: input, shape index: {}]   ;;  %s358_s2 = inlined_call_operand.vmem [shape: f32[8,1], index: 2, kind: input, shape index: {}]   ;;  %s359_s3 = inlined_call_operand.hbm [shape: f32[8,512], index: 3, kind: output, shape index: {}]  }
   0x1   :  { %9 = vsyncpa [#allocation4], 0  ;;  %s301_s12 = smov [#allocation2]   ;;  %s253_s16 = scalar_lea.hbm %s357_s1, 1280 }
   0x2   :  { %s17_s13 = sshll.u32 %s301_s12, 4  ;;  %p254_p0 = scmp.ne.s32.totalorder %s357_s1, %s253_s16  ;;  %s18_s13 = int_to_ptr.vmem [resolvable:$true] %s17_s13 }
   0x3   :  { %p257_p1 = scmp.lt.u32.totalorder %s253_s16, %s357_s1 }
   0x5   :  { %p259_p2 = pnand %p257_p1, %p254_p0 }
   0x7   :  { %262 = shalt.err (!%p259_p2)
}
   0x8   :  { %s263_s21 = scalar_lea.vmem %s18_s13, 1280  ;;  %p268_p4 = scmp.lt.s32.totalorder %s18_s13, %s18_s13 }
   0x9   :  { %p264_p3 = scmp.ne.s32.totalorder %s18_s13, %s263_s21  ;;  %p269_p5 = scmp.lt.s32.totalorder %s263_s21, %s263_s21 }
   0xb   :  { %p270_p6 = por %p269_p5, %p268_p4 }
   0xd   :  { %p271_p7 = pnand %p270_p6, %p264_p3 }
   0xf   :  { %274 = shalt.err (!%p271_p7)
}
  0x10   :  { %s302_s22 = smov 256   ;;  %s303_s23 = smov 16  }
  0x11   :  { %23 = dma.hbm_to_vmem [thread:$0]  %s357_s1, 1280, %s18_s13, [#allocation3], %s302_s22, %s302_s22, %s303_s23  }
  0x12   :  { %297 = dma.done.wait [#allocation3], 1280  }
  0x13   :  { %298 = vsyncadd [#allocation3], 4294966016  ;;  %v304_v0 = vmov 0   ;;  %v237_v1 = vld [vmem:[#allocation2 + $0x4] ss:$16 sps:$4 sm:$0xff]   ;;  %vm101_vm0 = vcmask 1043456  }
  0x14   :  { %146 = vmatprep.mubr.bf16.mxu0 %v304_v0  ;;  %187 = vmatprep.mubr.bf16.mxu1 %v304_v0  ;;  %v239_v2 = vld [vmem:[#allocation2 + $0xc] ss:$16 sps:$4 sm:$0xff]   ;;  %v241_v3 = vld [vmem:[#allocation2] ss:$16 sps:$4 sm:$0xff]   ;;  %v242_v4 = vld [vmem:[#allocation2 + $0x8] ss:$16 sps:$4 sm:$0xff]  }
  0x15   :  { %236 = vset.pattern.permute.xlu0 %v304_v0  ;;  %114 = vmatprep.subr.bf16.mxu0 %v237_v1  ;;  %v243_v5 = vld [vmem:[#allocation2 + $0x24] ss:$16 sps:$4 sm:$0xff]   ;;  %v245_v6 = vld [vmem:[#allocation2 + $0x2c] ss:$16 sps:$4 sm:$0xff]   ;;  %v247_v7 = vld [vmem:[#allocation2 + $0x20] ss:$16 sps:$4 sm:$0xff]  }
  0x16   :  { %155 = vmatprep.subr.bf16.mxu1 %v239_v2  ;;  %115 = vmatpush1.bf16.msra.mxu0 %v241_v3  ;;  %v248_v8 = vld [vmem:[#allocation2 + $0x28] ss:$16 sps:$4 sm:$0xff]   ;;  %v39_v9 = vld [vmem:[#allocation2 + $0x40] sm:$0xff]  ;;  %vm97_vm1 = vcmask 326656   ;;  %s305_s29 = smov [#allocation5]  }
  0x17   :  { %156 = vmatpush1.bf16.msra.mxu1 %v242_v4  ;;  %116 = vmatprep.subr.bf16.mxu0 %v243_v5  ;;  %v40_v10 = vld [vmem:[#allocation2 + $0x48] sm:$0xff]  ;;  %v224_v11 = vcombine.high %v39_v9, %v39_v9  ;;  %v223_v13 = vcombine.low %v39_v9, %v39_v9  ;;  %v41_v15 = vld [vmem:[%s358_s2] sm:$0xff]  ;;  %s206_s30 = sshll.u32 %s305_s29, 4  ;;  %s207_s30 = int_to_ptr.vmem [resolvable:$true] %s206_s30 }
  0x18   :  { %157 = vmatprep.subr.bf16.mxu1 %v245_v6  ;;  %v226_v12 = vcombine.high %v40_v10, %v40_v10  ;;  %v225_v14 = vcombine.low %v40_v10, %v40_v10  ;;  %44 = vperm.xlu0 %236, %v41_v15   ;;  %v30_v18 = vld [vmem:[%s356_s0] sm:$0xf]  ;;  %s275_s0 = scalar_lea.vmem %s207_s30, 512  ;;  %p280_p9 = scmp.lt.s32.totalorder %s207_s30, %s207_s30 }
  0x19   :  { %v103_v16 = vsel %vm101_vm0, %v223_v13, 0  ;;  %p276_p8 = scmp.ne.s32.totalorder %s207_s30, %s275_s0  ;;  %p281_p10 = scmp.lt.s32.totalorder %s275_s0, %s275_s0 }
  0x1a   :  { %117 = vmatpush1.bf16.msra.mxu0 %v247_v7  ;;  %v109_v17 = vsel %vm101_vm0, %v225_v14, 0 }
  0x1b   :  { %158 = vmatpush1.bf16.msra.mxu1 %v248_v8  ;;  %227 = vmatprep.subr.msk.bf16.mxu0 %vm101_vm0, %v224_v11  ;;  %p282_p11 = por %p281_p10, %p280_p9 }
  0x1c   :  { %229 = vmatprep.subr.msk.bf16.mxu1 %vm101_vm0, %v226_v12 }
  0x1d   :  { %p283_p12 = pnand %p282_p11, %p276_p8 }
  0x1e   :  { %119 = vmatpush1.bf16.msra.mxu0 %v103_v16 }
  0x1f   :  { %160 = vmatpush1.bf16.msra.mxu1 %v109_v17 }
  0x21   :  { %228 = vmatmul.mubr.msk.bf16.vlgmr.msra.gmra.mrb[0].mxu0 %vm97_vm1, %v30_v18 }
  0x22   :  { %230 = vmatmul.mubr.msk.bf16.vlgmr.msra.gmra.mrb[0].mxu1 %vm97_vm1, %v30_v18 }
  0x97   :  { %v45_v19 = vpop.permute.xlu0 %44 }
  0xf4   :  { %v148_v20 = vpop.f32.mrb[0].mxu0 }
  0xf5   :  { %v189_v21 = vpop.f32.mrb[0].mxu1  ;;  %v149_v22 = vadd.f32 %v148_v20, %v45_v19  ;;  %v150_v24 = vpop.f32.mrb[1].mxu0 }
  0xf6   :  { %v190_v23 = vadd.f32 %v189_v21, %v45_v19  ;;  %v191_v25 = vpop.f32.mrb[1].mxu1  ;;  %v151_v26 = vadd.f32 %v150_v24, %v45_v19  ;;  %v152_v28 = vpop.f32.mrb[2].mxu0 }
  0xf7   :  { %v192_v27 = vadd.f32 %v191_v25, %v45_v19  ;;  %v193_v29 = vpop.f32.mrb[2].mxu1  ;;  %196 = vst [vmem:[#allocation5] sm:$0xff] %v149_v22  ;;  %v153_v30 = vpop.f32.mrb[3].mxu0 }
  0xf8   :  { %198 = vst [vmem:[#allocation5 + $0x10] sm:$0xff] %v190_v23  ;;  %v194_v31 = vpop.f32.mrb[3].mxu1  ;;  %197 = vst [vmem:[#allocation5 + $0x8] sm:$0xff] %v151_v26 }
  0xf9   :  { %199 = vst [vmem:[#allocation5 + $0x18] sm:$0xff] %v192_v27 }
  0xfa   :  { %286 = shalt.err (!%p283_p12)
}
  0xfb   :  { %s287_s5 = scalar_lea.hbm %s359_s3, 512 }
  0xfc   :  { %p288_p13 = scmp.ne.s32.totalorder %s359_s3, %s287_s5  ;;  %p291_p0 = scmp.lt.u32.totalorder %s287_s5, %s359_s3 }
  0xfe   :  { %p293_p1 = pnand %p291_p0, %p288_p13 }
 0x100   :  { %296 = shalt.err (!%p293_p1)
}
 0x101   :  { %209 = dma.vmem_to_hbm [thread:$0]  %s207_s30, 512, %s359_s3, [#allocation4]  }
 0x102   :  { %299 = dma.done.wait [#allocation4], 512  }
 0x103   :  { %300 = vsyncadd [#allocation4], 4294966784 }
 0x104   :  { %213 = vsyncpa [#allocation3], 1 }
 0x105   :  { %214 = vsyncpa [#allocation4], 1 }

</bundles_post_ra>
